<compile_context>
chip_gen: v7x
topology: tpu7x:2x2x1
jax: 0.10.0
libtpu: 0.0.40
codegen_flags: <defaults>
</compile_context>

<pallas_src>
import functools
import math

import jax
import jax.numpy as jnp
from jax.experimental import pallas as pl
from jax.experimental.pallas import tpu as pltpu


def _bn_relu_epilogue(z, g_ref, beta_ref, o_ref, eps: float):
    """z: (B, TN) f32 pre-activation. Writes ReLU(BN(z)) into o_ref."""
    mean = jnp.mean(z, axis=0, keepdims=True)                 # (1, TN)
    centered = z - mean
    var = jnp.mean(centered * centered, axis=0, keepdims=True)  # biased (train BN)
    scale = jax.lax.rsqrt(var + eps) * g_ref[...]             # fold gamma into scale
    y = centered * scale + beta_ref[...]
    o_ref[...] = jnp.maximum(y, 0.0).astype(o_ref.dtype)


def _ffc_kernel_multi_k(x_ref, w_ref, b_ref, g_ref, beta_ref, o_ref, acc_ref,
                        *, eps: float):
    # x_ref:   (B, TK)   input activations
    # w_ref:   (TK, TN)  weight slice, (K, N) layout (lane-dense on N)
    # b_ref:   (1, TN)   linear bias
    # g_ref:   (1, TN)   batchnorm gamma
    # beta_ref:(1, TN)   batchnorm beta
    # o_ref:   (B, TN)   output tile (resident across the K grid axis)
    # acc_ref: (B, TN)   f32 accumulator scratch
    k = pl.program_id(1)

    @pl.when(k == 0)
    def _():
        acc_ref[...] = jnp.zeros_like(acc_ref)

    acc_ref[...] += jnp.dot(
        x_ref[...], w_ref[...], preferred_element_type=jnp.float32
    )

    @pl.when(k == pl.num_programs(1) - 1)
    def _():
        _bn_relu_epilogue(acc_ref[...] + b_ref[...], g_ref, beta_ref, o_ref, eps)


def _ffc_kernel_single_k(x_ref, w_ref, b_ref, g_ref, beta_ref, o_ref, *, eps: float):
    # Entire contraction in one shot: no accumulator scratch needed.
    z = jnp.dot(x_ref[...], w_ref[...], preferred_element_type=jnp.float32)
    _bn_relu_epilogue(z + b_ref[...], g_ref, beta_ref, o_ref, eps)


def _pick_tile(dim: int, target: int) -> int:
    """Largest tile <= target that divides dim and keeps (8,128) alignment."""
    if dim % 128 != 0 or dim <= target:
        return dim  # full extent (always legal for a BlockSpec)
    t = (target // 128) * 128
    while dim % t != 0:
        t -= 128
    return t


def ffc_forward(x, weight, bias, gamma, beta, *, eps: float = 1e-5,
                tk_target: int = 512, tn_target: int = 512):
    """Pallas equivalent of FFC(input_dim, output_dim)(x) in training mode.

    Args:
      x:      (B, K) input.
      weight: (N, K) Linear weight (PyTorch layout).
      bias:   (N,)   Linear bias.
      gamma:  (N,)   BatchNorm1d weight.
      beta:   (N,)   BatchNorm1d bias.
    Returns:
      (B, N) float32 output = ReLU(BatchNorm1d(x @ weight.T + bias)).
    """
    B, K = x.shape
    N, K2 = weight.shape
    assert K == K2, (K, K2)
    assert B >= 2, "BatchNorm1d training forward needs batch >= 2"

    x = x.astype(jnp.float32)
    wt = weight.astype(jnp.float32).T            # (K, N): lane-dense weight tiles
    b2 = bias.astype(jnp.float32).reshape(1, N)
    g2 = gamma.astype(jnp.float32).reshape(1, N)
    be2 = beta.astype(jnp.float32).reshape(1, N)

    tk = _pick_tile(K, tk_target)
    tn = _pick_tile(N, tn_target)
    n_tiles = N // tn
    k_tiles = K // tk

    out_shape = jax.ShapeDtypeStruct((B, N), jnp.float32)

    if k_tiles == 1:
        # Fast path: single MXU pass per feature tile, no accumulator scratch.
        kernel = functools.partial(_ffc_kernel_single_k, eps=eps)
        return pl.pallas_call(
            kernel,
            out_shape=out_shape,
            grid_spec=pltpu.PrefetchScalarGridSpec(
                num_scalar_prefetch=0,
                grid=(n_tiles,),
                in_specs=[
                    pl.BlockSpec((B, K), lambda j: (0, 0)),    # x
                    pl.BlockSpec((K, tn), lambda j: (0, j)),   # W^T
                    pl.BlockSpec((1, tn), lambda j: (0, j)),   # bias
                    pl.BlockSpec((1, tn), lambda j: (0, j)),   # gamma
                    pl.BlockSpec((1, tn), lambda j: (0, j)),   # beta
                ],
                out_specs=pl.BlockSpec((B, tn), lambda j: (0, j)),
            ),
            compiler_params=pltpu.CompilerParams(
                dimension_semantics=("parallel",)),
        )(x, wt, b2, g2, be2)

    kernel = functools.partial(_ffc_kernel_multi_k, eps=eps)
    return pl.pallas_call(
        kernel,
        out_shape=out_shape,
        grid_spec=pltpu.PrefetchScalarGridSpec(
            num_scalar_prefetch=0,
            grid=(n_tiles, k_tiles),                           # K (reduction) last
            in_specs=[
                pl.BlockSpec((B, tk), lambda j, k: (0, k)),    # x
                pl.BlockSpec((tk, tn), lambda j, k: (k, j)),   # W^T
                pl.BlockSpec((1, tn), lambda j, k: (0, j)),    # bias
                pl.BlockSpec((1, tn), lambda j, k: (0, j)),    # gamma
                pl.BlockSpec((1, tn), lambda j, k: (0, j)),    # beta
            ],
            out_specs=pl.BlockSpec((B, tn), lambda j, k: (0, j)),
            scratch_shapes=[pltpu.VMEM((B, tn), jnp.float32)],
        ),
        compiler_params=pltpu.CompilerParams(
            dimension_semantics=("parallel", "arbitrary")),
    )(x, wt, b2, g2, be2)


def _reference(x, weight, bias, gamma, beta, eps: float = 1e-5):
    z = x.astype(jnp.float32) @ weight.astype(jnp.float32).T + bias
    mean = jnp.mean(z, axis=0, keepdims=True)
    var = jnp.mean((z - mean) ** 2, axis=0, keepdims=True)  # biased, like BN train
    y = (z - mean) / jnp.sqrt(var + eps) * gamma + beta
    return jnp.maximum(y, 0.0)


def _run_case(key, batch, input_dim, output_dim, **kwargs):
    k_x, k_w, k_b, k_g, k_be = jax.random.split(key, 5)
    x = jax.random.normal(k_x, (batch, input_dim), dtype=jnp.float32)
    weight = jax.random.normal(k_w, (output_dim, input_dim), dtype=jnp.float32)
    weight = weight / math.sqrt(input_dim)
    bias = jax.random.normal(k_b, (output_dim,), dtype=jnp.float32) * 0.1
    gamma = 1.0 + 0.1 * jax.random.normal(k_g, (output_dim,), dtype=jnp.float32)
    beta = 0.1 * jax.random.normal(k_be, (output_dim,), dtype=jnp.float32)

    out = jax.block_until_ready(ffc_forward(x, weight, bias, gamma, beta, **kwargs))
    ref = _reference(x, weight, bias, gamma, beta)
    assert out.shape == (batch, output_dim), out.shape
    assert jnp.allclose(out, ref, atol=1e-4, rtol=1e-4), "mismatch vs reference"


if __name__ == "__main__":
    key = jax.random.PRNGKey(0)
    k0, k1 = jax.random.split(key)

    # Small shapes implied by the module (single-K fast path).
    _run_case(k0, batch=8, input_dim=32, output_dim=64)

    # Exercise the multi-K-tile accumulation path as well.
    _run_case(k1, batch=16, input_dim=256, output_dim=256,
              tk_target=128, tn_target=128)

    print("KERNEL_OK")
</pallas_src>

<mosaic_0001>
module attributes {stable_mosaic.version = 11 : i64} {
  func.func @_ffc_kernel_single_k(%arg0: i32, %arg1: memref<8x32xf32, #tpu.memory_space<vmem>>, %arg2: memref<32x64xf32, #tpu.memory_space<vmem>>, %arg3: memref<1x64xf32, #tpu.memory_space<vmem>>, %arg4: memref<1x64xf32, #tpu.memory_space<vmem>>, %arg5: memref<1x64xf32, #tpu.memory_space<vmem>>, %arg6: memref<8x64xf32, #tpu.memory_space<vmem>>) attributes {dimension_semantics = [#tpu.dimension_semantics<parallel>], iteration_bounds = array<i64: 1>, scalar_prefetch = 0 : i64, scratch_operands = 0 : i64, tpu.core_type = #tpu.core_type<tc>, window_params = [{pipeline_mode = #tpu.pipeline_mode<synchronous>, transform_indices = @transform_0, window_bounds = array<i64: 8, 32>}, {transform_indices = @transform_1, window_bounds = array<i64: 32, 64>}, {transform_indices = @transform_2, window_bounds = array<i64: 1, 64>}, {transform_indices = @transform_3, window_bounds = array<i64: 1, 64>}, {transform_indices = @transform_4, window_bounds = array<i64: 1, 64>}, {transform_indices = @transform_5, window_bounds = array<i64: 8, 64>}]} {
    %c0 = arith.constant 0 : index
    %c0_0 = arith.constant 0 : index
    %0 = vector.load %arg1[%c0, %c0_0] : memref<8x32xf32, #tpu.memory_space<vmem>>, vector<8x32xf32>
    %c0_1 = arith.constant 0 : index
    %c0_2 = arith.constant 0 : index
    %1 = vector.load %arg2[%c0_1, %c0_2] : memref<32x64xf32, #tpu.memory_space<vmem>>, vector<32x64xf32>
    %cst = arith.constant dense<0.000000e+00> : vector<8x64xf32>
    %2 = tpu.matmul %0, %1, %cst {dimension_numbers = #tpu.dot_dimension_numbers<[1], [0], [0], [1], [0, 0, 1, 1], [], []>} : vector<8x32xf32>, vector<32x64xf32>, vector<8x64xf32> -> vector<8x64xf32>
    %c0_3 = arith.constant 0 : index
    %c0_4 = arith.constant 0 : index
    %3 = vector.load %arg3[%c0_3, %c0_4] : memref<1x64xf32, #tpu.memory_space<vmem>>, vector<1x64xf32>
    %4 = vector.broadcast %3 : vector<1x64xf32> to vector<8x64xf32>
    %5 = arith.addf %2, %4 : vector<8x64xf32>
    %cst_5 = arith.constant dense<0.000000e+00> : vector<64xf32>
    %6 = vector.multi_reduction <add>, %5, %cst_5 [0] : vector<8x64xf32> to vector<64xf32>
    %7 = vector.shape_cast %6 : vector<64xf32> to vector<1x64xf32>
    %cst_6 = arith.constant 8.000000e+00 : f32
    %8 = vector.broadcast %cst_6 : f32 to vector<1x64xf32>
    %9 = arith.divf %7, %8 : vector<1x64xf32>
    %10 = vector.broadcast %9 : vector<1x64xf32> to vector<8x64xf32>
    %11 = arith.subf %5, %10 : vector<8x64xf32>
    %12 = arith.mulf %11, %11 : vector<8x64xf32>
    %cst_7 = arith.constant dense<0.000000e+00> : vector<64xf32>
    %13 = vector.multi_reduction <add>, %12, %cst_7 [0] : vector<8x64xf32> to vector<64xf32>
    %14 = vector.shape_cast %13 : vector<64xf32> to vector<1x64xf32>
    %cst_8 = arith.constant 8.000000e+00 : f32
    %15 = vector.broadcast %cst_8 : f32 to vector<1x64xf32>
    %16 = arith.divf %14, %15 : vector<1x64xf32>
    %cst_9 = arith.constant 9.99999974E-6 : f32
    %17 = vector.broadcast %cst_9 : f32 to vector<1x64xf32>
    %18 = arith.addf %16, %17 : vector<1x64xf32>
    %19 = math.rsqrt %18 : vector<1x64xf32>
    %c0_10 = arith.constant 0 : index
    %c0_11 = arith.constant 0 : index
    %20 = vector.load %arg4[%c0_10, %c0_11] : memref<1x64xf32, #tpu.memory_space<vmem>>, vector<1x64xf32>
    %21 = arith.mulf %19, %20 : vector<1x64xf32>
    %22 = vector.broadcast %21 : vector<1x64xf32> to vector<8x64xf32>
    %23 = arith.mulf %11, %22 : vector<8x64xf32>
    %c0_12 = arith.constant 0 : index
    %c0_13 = arith.constant 0 : index
    %24 = vector.load %arg5[%c0_12, %c0_13] : memref<1x64xf32, #tpu.memory_space<vmem>>, vector<1x64xf32>
    %25 = vector.broadcast %24 : vector<1x64xf32> to vector<8x64xf32>
    %26 = arith.addf %23, %25 : vector<8x64xf32>
    %cst_14 = arith.constant 0.000000e+00 : f32
    %27 = vector.broadcast %cst_14 : f32 to vector<8x64xf32>
    %28 = arith.maximumf %26, %27 : vector<8x64xf32>
    %c0_15 = arith.constant 0 : index
    %c0_16 = arith.constant 0 : index
    %29 = vector.load %arg6[%c0_15, %c0_16] : memref<8x64xf32, #tpu.memory_space<vmem>>, vector<8x64xf32>
    tpu.vector_store %arg6[%c0_15, %c0_16], %28 {strides = array<i32>} : memref<8x64xf32, #tpu.memory_space<vmem>>, vector<8x64xf32>,
    return
  }
  func.func @transform_0(%arg0: i32) -> (i32, i32) {
    %c0_i32 = arith.constant 0 : i32
    %c0_i32_0 = arith.constant 0 : i32
    %c0_i32_1 = arith.constant 0 : i32
    return %c0_i32, %c0_i32_0 : i32, i32
  }
  func.func @transform_1(%arg0: i32) -> (i32, i32) {
    %c0_i32 = arith.constant 0 : i32
    %c0_i32_0 = arith.constant 0 : i32
    return %c0_i32, %arg0 : i32, i32
  }
  func.func @transform_2(%arg0: i32) -> (i32, i32) {
    %c0_i32 = arith.constant 0 : i32
    %c0_i32_0 = arith.constant 0 : i32
    return %c0_i32, %arg0 : i32, i32
  }
  func.func @transform_3(%arg0: i32) -> (i32, i32) {
    %c0_i32 = arith.constant 0 : i32
    %c0_i32_0 = arith.constant 0 : i32
    return %c0_i32, %arg0 : i32, i32
  }
  func.func @transform_4(%arg0: i32) -> (i32, i32) {
    %c0_i32 = arith.constant 0 : i32
    %c0_i32_0 = arith.constant 0 : i32
    return %c0_i32, %arg0 : i32, i32
  }
  func.func @transform_5(%arg0: i32) -> (i32, i32) {
    %c0_i32 = arith.constant 0 : i32
    %c0_i32_0 = arith.constant 0 : i32
    return %c0_i32, %arg0 : i32, i32
  }
}

</mosaic_0001>

<bundles_post_ra>
// kernel: tpu_custom_call.1
= control target key start
LH: loop header
LB: loop body
LE: loop exit
PB: predicated region body
PF: predicated region fallthrough
CT: control target
= control target key end

     0   :  { %10 = vsyncpa [#allocation3], 0  ;;  %s388_s0 = inlined_call_operand.hbm [shape: f32[8,32], index: 0, kind: input, shape index: {}]   ;;  %s389_s1 = inlined_call_operand.hbm [shape: f32[32,64], index: 1, kind: input, shape index: {}]   ;;  %s390_s2 = inlined_call_operand.vmem [shape: f32[1,64], index: 2, kind: input, shape index: {}]   ;;  %s391_s3 = inlined_call_operand.vmem [shape: f32[1,64], index: 3, kind: input, shape index: {}]   ;;  %s392_s4 = inlined_call_operand.vmem [shape: f32[1,64], index: 4, kind: input, shape index: {}]   ;;  %s393_s5 = inlined_call_operand.hbm [shape: f32[8,64], index: 5, kind: output, shape index: {}]  }
   0x1   :  { %11 = vsyncpa [#allocation6], 0 }
   0x2   :  { %12 = vsyncpa [#allocation4], 0  ;;  %s295_s18 = smov [#allocation2]   ;;  %s296_s20 = smov [#allocation5]  }
   0x3   :  { %s19_s19 = sshll.u32 %s295_s18, 4  ;;  %s28_s21 = sshll.u32 %s296_s20, 4  ;;  %s20_s19 = int_to_ptr.vmem [resolvable:$true] %s19_s19  ;;  %s333_s21 = int_to_ptr.vmem [resolvable:$true] %s28_s21 }
   0x4   :  { %s223_s24 = scalar_lea.hbm %s388_s0, 128 }
   0x5   :  { %p224_p0 = scmp.ne.s32.totalorder %s388_s0, %s223_s24  ;;  %p227_p1 = scmp.lt.u32.totalorder %s223_s24, %s388_s0 }
   0x7   :  { %p229_p2 = pnand %p227_p1, %p224_p0 }
   0x9   :  { %232 = shalt.err (!%p229_p2)
}
   0xa   :  { %s233_s29 = scalar_lea.vmem %s20_s19, 128  ;;  %p238_p4 = scmp.lt.s32.totalorder %s20_s19, %s20_s19 }
   0xb   :  { %p234_p3 = scmp.ne.s32.totalorder %s20_s19, %s233_s29  ;;  %p239_p5 = scmp.lt.s32.totalorder %s233_s29, %s233_s29 }
   0xd   :  { %p240_p6 = por %p239_p5, %p238_p4 }
   0xf   :  { %p241_p7 = pnand %p240_p6, %p234_p3 }
  0x11   :  { %244 = shalt.err (!%p241_p7)
}
  0x12   :  { %22 = dma.hbm_to_vmem [thread:$0]  %s388_s0, 128, %s20_s19, [#allocation3]  }
  0x13   :  { %s245_s9 = scalar_lea.hbm %s389_s1, 512 }
  0x14   :  { %p246_p8 = scmp.ne.s32.totalorder %s389_s1, %s245_s9  ;;  %p249_p9 = scmp.lt.u32.totalorder %s245_s9, %s389_s1 }
  0x16   :  { %p251_p10 = pnand %p249_p9, %p246_p8 }
  0x18   :  { %254 = shalt.err (!%p251_p10)
}
  0x19   :  { %s255_s14 = scalar_lea.vmem %s333_s21, 512  ;;  %p260_p12 = scmp.lt.s32.totalorder %s333_s21, %s333_s21 }
  0x1a   :  { %p256_p11 = scmp.ne.s32.totalorder %s333_s21, %s255_s14  ;;  %p261_p13 = scmp.lt.s32.totalorder %s255_s14, %s255_s14 }
  0x1c   :  { %p262_p0 = por %p261_p13, %p260_p12 }
  0x1e   :  { %p263_p1 = pnand %p262_p0, %p256_p11 }
  0x20   :  { %266 = shalt.err (!%p263_p1)
}
  0x21   :  { %s297_s0 = smov 128   ;;  %s298_s15 = smov 8  }
  0x22   :  { %34 = dma.hbm_to_vmem [thread:$0]  %s389_s1, 512, %s333_s21, [#allocation6], %s297_s0, %s297_s0, %s298_s15  }
  0x23   :  { %289 = dma.done.wait [#allocation3], 128  }
  0x24   :  { %290 = vsyncadd [#allocation3], 4294967168 }
  0x25   :  { %291 = dma.done.wait [#allocation6], 512  }
  0x26   :  { %292 = vsyncadd [#allocation6], 4294966784  ;;  %v299_v0 = vmov 0.0|0.0   ;;  %vm300_vm0 = vmmov 0   ;;  %v301_v1 = vmov 0.0   ;;  %v48_v2 = vld [vmem:[#allocation5] sm:$0xff]  ;;  %v157_v32 = vlaneseq }
  0x27   :  { %207 = vmatprep.subr.bf16.mxu0 %v299_v0  ;;  %204 = vmatprep.mubr.msk.f32.mxu0 %vm300_vm0, %v301_v1  ;;  %v49_v3 = vld [vmem:[#allocation5 + $0x8] sm:$0xff]  ;;  %v50_v4 = vld [vmem:[#allocation5 + $0x10] sm:$0xff]  ;;  %v51_v6 = vld [vmem:[#allocation5 + $0x18] sm:$0xff]  ;;  %vm59_vm1 = vcmask 261120   ;;  %vm133_vm2 = vcmask 523264   ;;  %s302_s22 = smov [#allocation7]  }
  0x28   :  { %v208_v5 = vpack.c.bf16 %v49_v3, %v48_v2  ;;  %v211_v7 = vpack.c.bf16 %v51_v6, %v50_v4  ;;  %v47_v8 = vld [vmem:[#allocation2] sm:$0xff]  ;;  %v158_v33 = vshrl.u32 %v157_v32, 7  ;;  %s178_s23 = sshll.u32 %s302_s22, 4  ;;  %s179_s23 = int_to_ptr.vmem [resolvable:$true] %s178_s23 }
  0x29   :  { %v188_v9 = vld [vmem:[%s390_s2] ss:$0 sm:$0xff]  ;;  %s267_s24 = scalar_lea.vmem %s179_s23, 128  ;;  %p272_p3 = scmp.lt.s32.totalorder %s179_s23, %s179_s23 }
  0x2a   :  { %209 = vmatpush3.bf16.msra.mxu0 %v208_v5  ;;  %v155_v34 = vld [vmem:[%s391_s3] sm:$0x1]  ;;  %v159_v35 = vsub.s32 0, %v158_v33  ;;  %p268_p2 = scmp.ne.s32.totalorder %s179_s23, %s267_s24  ;;  %p273_p4 = scmp.lt.s32.totalorder %s267_s24, %s267_s24 }
  0x2b   :  { %210 = vmatprep.subr.bf16.mxu0 %v299_v0  ;;  %v190_v39 = vld [vmem:[%s392_s4] ss:$0 sm:$0xff] }
  0x2c   :  { %p274_p5 = por %p273_p4, %p272_p3 }
  0x2e   :  { %212 = vmatpush3.bf16.msra.mxu0 %v211_v7  ;;  %p275_p6 = pnand %p274_p5, %p268_p2 }
  0x31   :  { %205 = vmatmul.mubr.msk.f32.vlgmr.msra.gmra.mrb[0].mxu0 %vm59_vm1, %v47_v8 }
 0x104   :  { %v129_v10 = vpop.f32.mrb[0].mxu0 }
 0x105   :  { %v130_v11 = vadd.f32 %v188_v9, %v129_v10  ;;  %v206_v12 = vpop.f32.mrb[1].mxu0 }
 0x107   :  { %v134_v13 = vsel %vm133_vm2, %v130_v11, 0.0 }
 0x108   :  { %v135_v14 = vrot.slane %v134_v13, 4 }
 0x10a   :  { %v136_v15 = vadd.f32 %v135_v14, %v134_v13 }
 0x10c   :  { %v137_v16 = vrot.slane %v136_v15, 2 }
 0x10e   :  { %v138_v17 = vadd.f32 %v137_v16, %v136_v15 }
 0x110   :  { %v139_v18 = vrot.slane %v138_v17, 1 }
 0x112   :  { %v140_v19 = vadd.f32 %v139_v18, %v138_v17 }
 0x114   :  { %v142_v20 = vmul.f32 0.125, %v140_v19 }
 0x116   :  { %v143_v21 = vsub.f32 %v130_v11, %v142_v20 }
 0x118   :  { %v144_v22 = vmul.f32 %v143_v21, %v143_v21 }
 0x11a   :  { %v145_v23 = vsel %vm133_vm2, %v144_v22, 0.0 }
 0x11b   :  { %v146_v24 = vrot.slane %v145_v23, 4 }
 0x11d   :  { %v147_v25 = vadd.f32 %v146_v24, %v145_v23 }
 0x11f   :  { %v148_v26 = vrot.slane %v147_v25, 2 }
 0x121   :  { %v149_v27 = vadd.f32 %v148_v26, %v147_v25 }
 0x123   :  { %v150_v28 = vrot.slane %v149_v27, 1 }
 0x125   :  { %v151_v29 = vadd.f32 %v150_v28, %v149_v27 }
 0x127   :  { %v152_v30 = vmul.f32 0.125, %v151_v29 }
 0x129   :  { %v153_v31 = vadd.f32 1e-05, %v152_v30 }
 0x12b   :  { %221 = vrsqrt.f32 %v153_v31 }
 0x135   :  { %v222_v36 = vpop.eup %221 }
 0x136   :  { %v156_v37 = vmul.f32 %v222_v36, %v155_v34 }
 0x138   :  { %v160_v38 = vrot.slane %v156_v37, %v159_v35 }
 0x13a   :  { %v161_v40 = vmul.f32 %v160_v38, %v143_v21 }
 0x13c   :  { %v169_v41 = vadd.f32 %v190_v39, %v161_v40 }
 0x13e   :  { %v170_v42 = vmax.f32 %v169_v41, 0.0 }
 0x140   :  { %171 = vst.msk [vmem:[#allocation7] sm:$0xff] %vm133_vm2, %v170_v42 }
 0x141   :  { %278 = shalt.err (!%p275_p6)
}
 0x142   :  { %s279_s26 = scalar_lea.hbm %s393_s5, 128 }
 0x143   :  { %p280_p7 = scmp.ne.s32.totalorder %s393_s5, %s279_s26  ;;  %p283_p8 = scmp.lt.u32.totalorder %s279_s26, %s393_s5 }
 0x145   :  { %p285_p9 = pnand %p283_p8, %p280_p7 }
 0x147   :  { %288 = shalt.err (!%p285_p9)
}
 0x148   :  { %181 = dma.vmem_to_hbm [thread:$0]  %s179_s23, 128, %s393_s5, [#allocation4]  }
 0x149   :  { %293 = dma.done.wait [#allocation4], 128  }
 0x14a   :  { %294 = vsyncadd [#allocation4], 4294967168 }
 0x14b   :  { %185 = vsyncpa [#allocation3], 1 }
 0x14c   :  { %186 = vsyncpa [#allocation6], 1 }
 0x14d   :  { %187 = vsyncpa [#allocation4], 1 }

</bundles_post_ra>
